<compile_context>
chip_gen: v7x
topology: tpu7x:2x2x1
jax: 0.10.0
libtpu: 0.0.40
codegen_flags: <defaults>
</compile_context>

<pallas_src>
import math

import jax
import jax.numpy as jnp
from jax.experimental import pallas as pl
from jax.experimental.pallas import tpu as pltpu


def _round_up(x, m):
    return ((x + m - 1) // m) * m


def _leaky_relu(x, slope=0.2):
    return jnp.where(x > 0, x, slope * x)


# ---------------------------------------------------------------------------
# Kernel
# ---------------------------------------------------------------------------
def mlp_2hl_g_kernel(noise_ref, att_ref,
                     w1n_ref, w1a_ref, b1_ref,
                     w2_ref, b2_ref,
                     w3_ref, b3_ref,
                     out_ref,
                     h1_sc, acc_sc):
    """Grid = (batch_tiles i, hidden_tiles j).

    j == 0    : h1 = lrelu(noise @ W1n + att @ W1a + b1)   -> h1 scratch
                acc = 0
    every j   : h2_j = lrelu(h1 @ W2[:, jblk] + b2[jblk])   (fc2 output tile)
                acc += h2_j @ W3[jblk, :]                    (fc3 K-chunk)
    j == last : out = relu(acc + b3)

    fc2's output tile j is exactly fc3's contraction chunk j, so h2 is never
    materialized in full and W2/W3 are streamed (double-buffered) tiles.
    """
    j = pl.program_id(1)
    nj = pl.num_programs(1)

    @pl.when(j == 0)
    def _():
        h1 = jnp.dot(noise_ref[...], w1n_ref[...],
                     preferred_element_type=jnp.float32)
        h1 = h1 + jnp.dot(att_ref[...], w1a_ref[...],
                          preferred_element_type=jnp.float32)
        h1 = _leaky_relu(h1 + b1_ref[...])            # f32 elementwise (v5e-safe)
        h1_sc[...] = h1.astype(h1_sc.dtype)           # store in compute dtype
        acc_sc[...] = jnp.zeros_like(acc_sc)

    h2 = jnp.dot(h1_sc[...], w2_ref[...], preferred_element_type=jnp.float32)
    h2 = _leaky_relu(h2 + b2_ref[...])                # f32 elementwise
    acc_sc[...] += jnp.dot(h2.astype(w3_ref.dtype), w3_ref[...],
                           preferred_element_type=jnp.float32)

    @pl.when(j == nj - 1)
    def _():
        out_ref[...] = jnp.maximum(acc_sc[...] + b3_ref[...],
                                   0.0).astype(out_ref.dtype)


# ---------------------------------------------------------------------------
# One-time parameter preparation (hoisted out of the per-call path)
# ---------------------------------------------------------------------------
def prepare_params(w1, b1, w2, b2, w3, b3, nz, *, param_dtype=jnp.bfloat16):
    """Split fc1 along the concat boundary, zero-pad its K dims to multiples
    of 128 (full MXU passes), cast weights to the compute dtype, keep biases
    in f32.  Weights are (in_features, out_features) i.e. transposed from
    PyTorch's (out, in), so the kernel computes plain x @ W + b."""
    d_in, ngh = w1.shape
    att_size = d_in - nz
    res_size = w3.shape[1]
    nz_pad = _round_up(max(nz, 1), 128)
    att_pad = _round_up(max(att_size, 1), 128)

    w1c = w1.astype(param_dtype)
    w1n = jnp.zeros((nz_pad, ngh), param_dtype).at[:nz, :].set(w1c[:nz, :])
    w1a = jnp.zeros((att_pad, ngh), param_dtype).at[:att_size, :].set(w1c[nz:, :])

    return dict(
        nz=nz, att_size=att_size, ngh=ngh, res_size=res_size,
        nz_pad=nz_pad, att_pad=att_pad, param_dtype=param_dtype,
        w1n=w1n, w1a=w1a,
        b1=b1.reshape(1, ngh).astype(jnp.float32),
        w2=w2.astype(param_dtype),
        b2=b2.reshape(1, ngh).astype(jnp.float32),
        w3=w3.astype(param_dtype),
        b3=b3.reshape(1, res_size).astype(jnp.float32),
    )


# ---------------------------------------------------------------------------
# Forward wrapper
# ---------------------------------------------------------------------------
def mlp_2hl_g_forward(noise, att, params, *, block_b=256, block_n=1024,
                      out_dtype=None):
    """noise: (B, nz), att: (B, attSize) -> (B, resSize)."""
    B, nz = noise.shape
    att_size = att.shape[1]
    assert nz == params["nz"] and att_size == params["att_size"]
    ngh, res = params["ngh"], params["res_size"]
    nz_pad, att_pad = params["nz_pad"], params["att_pad"]
    pdt = params["param_dtype"]
    out_dtype = out_dtype or noise.dtype
    f32 = jnp.float32

    # --- batch tiling: >=2 tiles when B allows (v7x megacore), minimal pad ---
    n_tiles_min = max(1, math.ceil(B / block_b))
    if B >= 16:
        n_tiles_min = max(n_tiles_min, 2)
    tb = _round_up(math.ceil(B / n_tiles_min), 8)
    nb = math.ceil(B / tb)
    b_pad = nb * tb

    # --- hidden-dim tiling (fc2 output tile == fc3 K chunk) ---
    if ngh % 128 == 0:
        tn = max(128, min(_round_up(block_n, 128), ngh))
        while ngh % tn:
            tn -= 128
    else:
        tn = ngh                       # small / unaligned hidden: single tile
    nj = ngh // tn

    # --- activations: pad batch + K dims, cast to compute dtype ---
    noise_x = jnp.pad(noise.astype(pdt), ((0, b_pad - B), (0, nz_pad - nz)))
    att_x = jnp.pad(att.astype(pdt), ((0, b_pad - B), (0, att_pad - att_size)))

    # --- VMEM / cost accounting ---
    def nbytes(shape, dt):
        return math.prod(shape) * jnp.dtype(dt).itemsize

    w_resident = (nbytes((nz_pad, ngh), pdt) + nbytes((att_pad, ngh), pdt)
                  + nbytes((1, ngh), f32) + nbytes((1, res), f32))
    streamed = 2 * (nbytes((ngh, tn), pdt) + nbytes((1, tn), f32)
                    + nbytes((tn, res), pdt)
                    + nbytes((tb, nz_pad), pdt) + nbytes((tb, att_pad), pdt)
                    + nbytes((tb, res), out_dtype))
    scratch = nbytes((tb, ngh), pdt) + nbytes((tb, res), f32)

    flops = 2 * b_pad * ((nz_pad + att_pad) * ngh + ngh * ngh + ngh * res)
    bytes_accessed = (nbytes((b_pad, nz_pad), pdt) + nbytes((b_pad, att_pad), pdt)
                      + nbytes((b_pad, res), out_dtype)
                      + nbytes((nz_pad + att_pad, ngh), pdt)
                      + nbytes((ngh, ngh), pdt) + nbytes((ngh, res), pdt)
                      + nbytes((1, 2 * ngh + res), f32))
    cost = pl.CostEstimate(flops=flops, transcendentals=0,
                           bytes_accessed=bytes_accessed)

    def run(single_buffer_weights):
        def wspec(shape, imap):
            # Constant index map -> single buffer halves resident weight VMEM.
            if single_buffer_weights:
                return pl.BlockSpec(shape, imap, pipeline_mode=pl.Buffered(1))
            return pl.BlockSpec(shape, imap)

        in_specs = [
            # activations: tiled over batch, constant over j (no re-fetch)
            pl.BlockSpec((tb, nz_pad), lambda i, j: (i, 0)),
            pl.BlockSpec((tb, att_pad), lambda i, j: (i, 0)),
            # fc1 weights / bias: VMEM-resident, single-buffered
            wspec((nz_pad, ngh), lambda i, j: (0, 0)),
            wspec((att_pad, ngh), lambda i, j: (0, 0)),
            wspec((1, ngh), lambda i, j: (0, 0)),
            # fc2 / fc3: streamed tiles, double-buffered (DMA overlaps MXU)
            pl.BlockSpec((ngh, tn), lambda i, j: (0, j)),
            pl.BlockSpec((1, tn), lambda i, j: (0, j)),
            pl.BlockSpec((tn, res), lambda i, j: (j, 0)),
            wspec((1, res), lambda i, j: (0, 0)),
        ]
        vmem_need = (w_resident * (1 if single_buffer_weights else 2)
                     + streamed + scratch)
        vmem_limit = min(128 * 1024 * 1024,
                         max(32 * 1024 * 1024, int(vmem_need * 1.3)))

        return pl.pallas_call(
            mlp_2hl_g_kernel,
            out_shape=jax.ShapeDtypeStruct((b_pad, res), out_dtype),
            grid_spec=pltpu.PrefetchScalarGridSpec(
                num_scalar_prefetch=0,
                grid=(nb, nj),
                in_specs=in_specs,
                out_specs=pl.BlockSpec((tb, res), lambda i, j: (i, 0)),
                scratch_shapes=[pltpu.VMEM((tb, ngh), pdt),       # h1
                                pltpu.VMEM((tb, res), jnp.float32)],  # fc3 acc
            ),
            compiler_params=pltpu.CompilerParams(
                dimension_semantics=("parallel", "arbitrary"),
                vmem_limit_bytes=vmem_limit),
            cost_estimate=cost,
        )(noise_x, att_x, params["w1n"], params["w1a"], params["b1"],
          params["w2"], params["b2"], params["w3"], params["b3"])

    try:
        out = run(single_buffer_weights=True)
    except Exception:
        # Fallback if this jax build rejects pipeline_mode=pl.Buffered(1).
        out = run(single_buffer_weights=False)

    return out[:B] if b_pad != B else out


# ---------------------------------------------------------------------------
# Self-test
# ---------------------------------------------------------------------------
if __name__ == "__main__":
    # Small, forward-consistent shapes (nz + attSize -> ngh -> ngh -> resSize).
    batch, nz, att_size, ngh, res_size = 8, 16, 16, 64, 32

    key = jax.random.PRNGKey(0)
    kn, ka, k1, k2, k3 = jax.random.split(key, 5)
    noise = jax.random.normal(kn, (batch, nz), jnp.float32)
    att = jax.random.normal(ka, (batch, att_size), jnp.float32)

    # weights_init: Linear weights ~ N(0, 0.02), biases = 0.
    d_in = nz + att_size
    w1 = 0.02 * jax.random.normal(k1, (d_in, ngh), jnp.float32)
    b1 = jnp.zeros((ngh,), jnp.float32)
    w2 = 0.02 * jax.random.normal(k2, (ngh, ngh), jnp.float32)
    b2 = jnp.zeros((ngh,), jnp.float32)
    w3 = 0.02 * jax.random.normal(k3, (ngh, res_size), jnp.float32)
    b3 = jnp.zeros((res_size,), jnp.float32)

    params = prepare_params(w1, b1, w2, b2, w3, b3, nz,
                            param_dtype=jnp.bfloat16)
    out = mlp_2hl_g_forward(noise, att, params)
    out = jax.block_until_ready(out)
    assert out.shape == (batch, res_size)

    # Reference 1: same mixed-precision recipe as the kernel (bf16 operands,
    # f32 accumulation) -> tight tolerance.
    pdt = jnp.bfloat16
    def mm(a, b):
        return jnp.dot(a.astype(pdt), b.astype(pdt),
                       preferred_element_type=jnp.float32)
    h = mm(noise, w1[:nz]) + mm(att, w1[nz:]) + b1
    h = jnp.where(h > 0, h, 0.2 * h)
    h = mm(h, w2) + b2
    h = jnp.where(h > 0, h, 0.2 * h)
    ref_mixed = jnp.maximum(mm(h, w3) + b3, 0.0)

    # Reference 2: pure-f32 module semantics -> loose tolerance (bf16 error).
    x = jnp.concatenate([noise, att], axis=1)
    h = x @ w1 + b1
    h = jnp.where(h > 0, h, 0.2 * h)
    h = h @ w2 + b2
    h = jnp.where(h > 0, h, 0.2 * h)
    ref_f32 = jnp.maximum(h @ w3 + b3, 0.0)

    err_mixed = float(jnp.max(jnp.abs(out - ref_mixed)))
    err_f32 = float(jnp.max(jnp.abs(out - ref_f32)))
    assert jnp.allclose(out, ref_mixed, atol=1e-4, rtol=1e-3), err_mixed
    assert jnp.allclose(out, ref_f32, atol=5e-3, rtol=5e-2), err_f32

    print("KERNEL_OK")
</pallas_src>

<mosaic_0001>
module attributes {stable_mosaic.version = 11 : i64} {
  func.func @mlp_2hl_g_kernel(%arg0: i32, %arg1: i32, %arg2: memref<8x128xbf16, #tpu.memory_space<vmem>>, %arg3: memref<8x128xbf16, #tpu.memory_space<vmem>>, %arg4: memref<128x64xbf16, #tpu.memory_space<vmem>>, %arg5: memref<128x64xbf16, #tpu.memory_space<vmem>>, %arg6: memref<1x64xf32, #tpu.memory_space<vmem>>, %arg7: memref<64x64xbf16, #tpu.memory_space<vmem>>, %arg8: memref<1x64xf32, #tpu.memory_space<vmem>>, %arg9: memref<64x32xbf16, #tpu.memory_space<vmem>>, %arg10: memref<1x32xf32, #tpu.memory_space<vmem>>, %arg11: memref<8x32xf32, #tpu.memory_space<vmem>>, %arg12: memref<8x64xbf16, #tpu.memory_space<vmem>>, %arg13: memref<8x32xf32, #tpu.memory_space<vmem>>) attributes {dimension_semantics = [#tpu.dimension_semantics<parallel>, #tpu.dimension_semantics<arbitrary>], iteration_bounds = array<i64: 1, 1>, scalar_prefetch = 0 : i64, scratch_operands = 2 : i64, tpu.core_type = #tpu.core_type<tc>, window_params = [{transform_indices = @transform_0, window_bounds = array<i64: 8, 128>}, {transform_indices = @transform_1, window_bounds = array<i64: 8, 128>}, {pipeline_mode = #tpu.pipeline_mode<synchronous>, transform_indices = @transform_2, window_bounds = array<i64: 128, 64>}, {pipeline_mode = #tpu.pipeline_mode<synchronous>, transform_indices = @transform_3, window_bounds = array<i64: 128, 64>}, {pipeline_mode = #tpu.pipeline_mode<synchronous>, transform_indices = @transform_4, window_bounds = array<i64: 1, 64>}, {transform_indices = @transform_5, window_bounds = array<i64: 64, 64>}, {transform_indices = @transform_6, window_bounds = array<i64: 1, 64>}, {transform_indices = @transform_7, window_bounds = array<i64: 64, 32>}, {pipeline_mode = #tpu.pipeline_mode<synchronous>, transform_indices = @transform_8, window_bounds = array<i64: 1, 32>}, {transform_indices = @transform_9, window_bounds = array<i64: 8, 32>}]} {
    %c0_i32 = arith.constant 0 : i32
    %0 = arith.cmpi eq, %arg1, %c0_i32 : i32
    %1 = arith.extui %0 : i1 to i32
    %c0_i32_0 = arith.constant 0 : i32
    %2 = arith.cmpi ne, %1, %c0_i32_0 : i32
    scf.if %2 {
      %c0_17 = arith.constant 0 : index
      %c0_18 = arith.constant 0 : index
      %23 = vector.load %arg2[%c0_17, %c0_18] : memref<8x128xbf16, #tpu.memory_space<vmem>>, vector<8x128xbf16>
      %c0_19 = arith.constant 0 : index
      %c0_20 = arith.constant 0 : index
      %24 = vector.load %arg4[%c0_19, %c0_20] : memref<128x64xbf16, #tpu.memory_space<vmem>>, vector<128x64xbf16>
      %cst_21 = arith.constant dense<0.000000e+00> : vector<8x64xf32>
      %25 = tpu.matmul %23, %24, %cst_21 {dimension_numbers = #tpu.dot_dimension_numbers<[1], [0], [0], [1], [0, 0, 1, 1], [], []>} : vector<8x128xbf16>, vector<128x64xbf16>, vector<8x64xf32> -> vector<8x64xf32>
      %c0_22 = arith.constant 0 : index
      %c0_23 = arith.constant 0 : index
      %26 = vector.load %arg3[%c0_22, %c0_23] : memref<8x128xbf16, #tpu.memory_space<vmem>>, vector<8x128xbf16>
      %c0_24 = arith.constant 0 : index
      %c0_25 = arith.constant 0 : index
      %27 = vector.load %arg5[%c0_24, %c0_25] : memref<128x64xbf16, #tpu.memory_space<vmem>>, vector<128x64xbf16>
      %cst_26 = arith.constant dense<0.000000e+00> : vector<8x64xf32>
      %28 = tpu.matmul %26, %27, %cst_26 {dimension_numbers = #tpu.dot_dimension_numbers<[1], [0], [0], [1], [0, 0, 1, 1], [], []>} : vector<8x128xbf16>, vector<128x64xbf16>, vector<8x64xf32> -> vector<8x64xf32>
      %29 = arith.addf %25, %28 : vector<8x64xf32>
      %c0_27 = arith.constant 0 : index
      %c0_28 = arith.constant 0 : index
      %30 = vector.load %arg6[%c0_27, %c0_28] : memref<1x64xf32, #tpu.memory_space<vmem>>, vector<1x64xf32>
      %31 = vector.broadcast %30 : vector<1x64xf32> to vector<8x64xf32>
      %32 = arith.addf %29, %31 : vector<8x64xf32>
      %cst_29 = arith.constant 0.000000e+00 : f32
      %33 = vector.broadcast %cst_29 : f32 to vector<8x64xf32>
      %34 = arith.cmpf ogt, %32, %33 : vector<8x64xf32>
      %cst_30 = arith.constant 2.000000e-01 : f32
      %35 = vector.broadcast %cst_30 : f32 to vector<8x64xf32>
      %36 = arith.mulf %35, %32 : vector<8x64xf32>
      %37 = arith.select %34, %32, %36 : vector<8x64xi1>, vector<8x64xf32>
      %38 = arith.truncf %37 : vector<8x64xf32> to vector<8x64xbf16>
      %c0_31 = arith.constant 0 : index
      %c0_32 = arith.constant 0 : index
      %39 = vector.load %arg12[%c0_31, %c0_32] : memref<8x64xbf16, #tpu.memory_space<vmem>>, vector<8x64xbf16>
      tpu.vector_store %arg12[%c0_31, %c0_32], %38 {strides = array<i32>} : memref<8x64xbf16, #tpu.memory_space<vmem>>, vector<8x64xbf16>,
      %cst_33 = arith.constant 0.000000e+00 : f32
      %40 = vector.broadcast %cst_33 : f32 to vector<8x32xf32>
      %c0_34 = arith.constant 0 : index
      %c0_35 = arith.constant 0 : index
      %41 = vector.load %arg13[%c0_34, %c0_35] : memref<8x32xf32, #tpu.memory_space<vmem>>, vector<8x32xf32>
      tpu.vector_store %arg13[%c0_34, %c0_35], %40 {strides = array<i32>} : memref<8x32xf32, #tpu.memory_space<vmem>>, vector<8x32xf32>,
    } else {
    }
    %c0 = arith.constant 0 : index
    %c0_1 = arith.constant 0 : index
    %3 = vector.load %arg12[%c0, %c0_1] : memref<8x64xbf16, #tpu.memory_space<vmem>>, vector<8x64xbf16>
    %c0_2 = arith.constant 0 : index
    %c0_3 = arith.constant 0 : index
    %4 = vector.load %arg7[%c0_2, %c0_3] : memref<64x64xbf16, #tpu.memory_space<vmem>>, vector<64x64xbf16>
    %cst = arith.constant dense<0.000000e+00> : vector<8x64xf32>
    %5 = tpu.matmul %3, %4, %cst {dimension_numbers = #tpu.dot_dimension_numbers<[1], [0], [0], [1], [0, 0, 1, 1], [], []>} : vector<8x64xbf16>, vector<64x64xbf16>, vector<8x64xf32> -> vector<8x64xf32>
    %c0_4 = arith.constant 0 : index
    %c0_5 = arith.constant 0 : index
    %6 = vector.load %arg8[%c0_4, %c0_5] : memref<1x64xf32, #tpu.memory_space<vmem>>, vector<1x64xf32>
    %7 = vector.broadcast %6 : vector<1x64xf32> to vector<8x64xf32>
    %8 = arith.addf %5, %7 : vector<8x64xf32>
    %cst_6 = arith.constant 0.000000e+00 : f32
    %9 = vector.broadcast %cst_6 : f32 to vector<8x64xf32>
    %10 = arith.cmpf ogt, %8, %9 : vector<8x64xf32>
    %cst_7 = arith.constant 2.000000e-01 : f32
    %11 = vector.broadcast %cst_7 : f32 to vector<8x64xf32>
    %12 = arith.mulf %11, %8 : vector<8x64xf32>
    %13 = arith.select %10, %8, %12 : vector<8x64xi1>, vector<8x64xf32>
    %c0_8 = arith.constant 0 : index
    %c0_9 = arith.constant 0 : index
    %14 = vector.load %arg13[%c0_8, %c0_9] : memref<8x32xf32, #tpu.memory_space<vmem>>, vector<8x32xf32>
    %15 = arith.truncf %13 : vector<8x64xf32> to vector<8x64xbf16>
    %c0_10 = arith.constant 0 : index
    %c0_11 = arith.constant 0 : index
    %16 = vector.load %arg9[%c0_10, %c0_11] : memref<64x32xbf16, #tpu.memory_space<vmem>>, vector<64x32xbf16>
    %cst_12 = arith.constant dense<0.000000e+00> : vector<8x32xf32>
    %17 = tpu.matmul %15, %16, %cst_12 {dimension_numbers = #tpu.dot_dimension_numbers<[1], [0], [0], [1], [0, 0, 1, 1], [], []>} : vector<8x64xbf16>, vector<64x32xbf16>, vector<8x32xf32> -> vector<8x32xf32>
    %18 = arith.addf %14, %17 : vector<8x32xf32>
    %c0_13 = arith.constant 0 : index
    %c0_14 = arith.constant 0 : index
    %19 = vector.load %arg13[%c0_13, %c0_14] : memref<8x32xf32, #tpu.memory_space<vmem>>, vector<8x32xf32>
    tpu.vector_store %arg13[%c0_13, %c0_14], %18 {strides = array<i32>} : memref<8x32xf32, #tpu.memory_space<vmem>>, vector<8x32xf32>,
    %c0_i32_15 = arith.constant 0 : i32
    %20 = arith.cmpi eq, %arg1, %c0_i32_15 : i32
    %21 = arith.extui %20 : i1 to i32
    %c0_i32_16 = arith.constant 0 : i32
    %22 = arith.cmpi ne, %21, %c0_i32_16 : i32
    scf.if %22 {
      %c0_17 = arith.constant 0 : index
      %c0_18 = arith.constant 0 : index
      %23 = vector.load %arg13[%c0_17, %c0_18] : memref<8x32xf32, #tpu.memory_space<vmem>>, vector<8x32xf32>
      %c0_19 = arith.constant 0 : index
      %c0_20 = arith.constant 0 : index
      %24 = vector.load %arg10[%c0_19, %c0_20] : memref<1x32xf32, #tpu.memory_space<vmem>>, vector<1x32xf32>
      %25 = vector.broadcast %24 : vector<1x32xf32> to vector<8x32xf32>
      %26 = arith.addf %23, %25 : vector<8x32xf32>
      %cst_21 = arith.constant 0.000000e+00 : f32
      %27 = vector.broadcast %cst_21 : f32 to vector<8x32xf32>
      %28 = arith.maximumf %26, %27 : vector<8x32xf32>
      %c0_22 = arith.constant 0 : index
      %c0_23 = arith.constant 0 : index
      %29 = vector.load %arg11[%c0_22, %c0_23] : memref<8x32xf32, #tpu.memory_space<vmem>>, vector<8x32xf32>
      tpu.vector_store %arg11[%c0_22, %c0_23], %28 {strides = array<i32>} : memref<8x32xf32, #tpu.memory_space<vmem>>, vector<8x32xf32>,
    } else {
    }
    return
  }
  func.func @transform_0(%arg0: i32, %arg1: i32) -> (i32, i32) {
    %c0_i32 = arith.constant 0 : i32
    %c0_i32_0 = arith.constant 0 : i32
    return %arg0, %c0_i32 : i32, i32
  }
  func.func @transform_1(%arg0: i32, %arg1: i32) -> (i32, i32) {
    %c0_i32 = arith.constant 0 : i32
    %c0_i32_0 = arith.constant 0 : i32
    return %arg0, %c0_i32 : i32, i32
  }
  func.func @transform_2(%arg0: i32, %arg1: i32) -> (i32, i32) {
    %c0_i32 = arith.constant 0 : i32
    %c0_i32_0 = arith.constant 0 : i32
    %c0_i32_1 = arith.constant 0 : i32
    return %c0_i32, %c0_i32_0 : i32, i32
  }
  func.func @transform_3(%arg0: i32, %arg1: i32) -> (i32, i32) {
    %c0_i32 = arith.constant 0 : i32
    %c0_i32_0 = arith.constant 0 : i32
    %c0_i32_1 = arith.constant 0 : i32
    return %c0_i32, %c0_i32_0 : i32, i32
  }
  func.func @transform_4(%arg0: i32, %arg1: i32) -> (i32, i32) {
    %c0_i32 = arith.constant 0 : i32
    %c0_i32_0 = arith.constant 0 : i32
    %c0_i32_1 = arith.constant 0 : i32
    return %c0_i32, %c0_i32_0 : i32, i32
  }
  func.func @transform_5(%arg0: i32, %arg1: i32) -> (i32, i32) {
    %c0_i32 = arith.constant 0 : i32
    %c0_i32_0 = arith.constant 0 : i32
    return %c0_i32, %arg1 : i32, i32
  }
  func.func @transform_6(%arg0: i32, %arg1: i32) -> (i32, i32) {
    %c0_i32 = arith.constant 0 : i32
    %c0_i32_0 = arith.constant 0 : i32
    return %c0_i32, %arg1 : i32, i32
  }
  func.func @transform_7(%arg0: i32, %arg1: i32) -> (i32, i32) {
    %c0_i32 = arith.constant 0 : i32
    %c0_i32_0 = arith.constant 0 : i32
    return %arg1, %c0_i32 : i32, i32
  }
  func.func @transform_8(%arg0: i32, %arg1: i32) -> (i32, i32) {
    %c0_i32 = arith.constant 0 : i32
    %c0_i32_0 = arith.constant 0 : i32
    %c0_i32_1 = arith.constant 0 : i32
    return %c0_i32, %c0_i32_0 : i32, i32
  }
  func.func @transform_9(%arg0: i32, %arg1: i32) -> (i32, i32) {
    %c0_i32 = arith.constant 0 : i32
    %c0_i32_0 = arith.constant 0 : i32
    return %arg0, %c0_i32 : i32, i32
  }
}

module attributes {stable_mosaic.version = 11 : i64} {
  func.func @mlp_2hl_g_kernel(%arg0: i32, %arg1: i32, %arg2: memref<8x128xbf16, #tpu.memory_space<vmem>>, %arg3: memref<8x128xbf16, #tpu.memory_space<vmem>>, %arg4: memref<128x64xbf16, #tpu.memory_space<vmem>>, %arg5: memref<128x64xbf16, #tpu.memory_space<vmem>>, %arg6: memref<1x64xf32, #tpu.memory_space<vmem>>, %arg7: memref<64x64xbf16, #tpu.memory_space<vmem>>, %arg8: memref<1x64xf32, #tpu.memory_space<vmem>>, %arg9: memref<64x32xbf16, #tpu.memory_space<vmem>>, %arg10: memref<1x32xf32, #tpu.memory_space<vmem>>, %arg11: memref<8x32xf32, #tpu.memory_space<vmem>>, %arg12: memref<8x64xbf16, #tpu.memory_space<vmem>>, %arg13: memref<8x32xf32, #tpu.memory_space<vmem>>) attributes {dimension_semantics = [#tpu.dimension_semantics<parallel>, #tpu.dimension_semantics<arbitrary>], iteration_bounds = array<i64: 1, 1>, scalar_prefetch = 0 : i64, scratch_operands = 2 : i64, tpu.core_type = #tpu.core_type<tc>, window_params = [{transform_indices = @transform_0, window_bounds = array<i64: 8, 128>}, {transform_indices = @transform_1, window_bounds = array<i64: 8, 128>}, {pipeline_mode = #tpu.pipeline_mode<synchronous>, transform_indices = @transform_2, window_bounds = array<i64: 128, 64>}, {pipeline_mode = #tpu.pipeline_mode<synchronous>, transform_indices = @transform_3, window_bounds = array<i64: 128, 64>}, {pipeline_mode = #tpu.pipeline_mode<synchronous>, transform_indices = @transform_4, window_bounds = array<i64: 1, 64>}, {transform_indices = @transform_5, window_bounds = array<i64: 64, 64>}, {transform_indices = @transform_6, window_bounds = array<i64: 1, 64>}, {transform_indices = @transform_7, window_bounds = array<i64: 64, 32>}, {pipeline_mode = #tpu.pipeline_mode<synchronous>, transform_indices = @transform_8, window_bounds = array<i64: 1, 32>}, {transform_indices = @transform_9, window_bounds = array<i64: 8, 32>}]} {
    %c0_i32 = arith.constant 0 : i32
    %0 = arith.cmpi eq, %arg1, %c0_i32 : i32
    %1 = arith.extui %0 : i1 to i32
    %c0_i32_0 = arith.constant 0 : i32
    %2 = arith.cmpi ne, %1, %c0_i32_0 : i32
    scf.if %2 {
      %c0_17 = arith.constant 0 : index
      %c0_18 = arith.constant 0 : index
      %23 = vector.load %arg2[%c0_17, %c0_18] : memref<8x128xbf16, #tpu.memory_space<vmem>>, vector<8x128xbf16>
      %c0_19 = arith.constant 0 : index
      %c0_20 = arith.constant 0 : index
      %24 = vector.load %arg4[%c0_19, %c0_20] : memref<128x64xbf16, #tpu.memory_space<vmem>>, vector<128x64xbf16>
      %cst_21 = arith.constant dense<0.000000e+00> : vector<8x64xf32>
      %25 = tpu.matmul %23, %24, %cst_21 {dimension_numbers = #tpu.dot_dimension_numbers<[1], [0], [0], [1], [0, 0, 1, 1], [], []>} : vector<8x128xbf16>, vector<128x64xbf16>, vector<8x64xf32> -> vector<8x64xf32>
      %c0_22 = arith.constant 0 : index
      %c0_23 = arith.constant 0 : index
      %26 = vector.load %arg3[%c0_22, %c0_23] : memref<8x128xbf16, #tpu.memory_space<vmem>>, vector<8x128xbf16>
      %c0_24 = arith.constant 0 : index
      %c0_25 = arith.constant 0 : index
      %27 = vector.load %arg5[%c0_24, %c0_25] : memref<128x64xbf16, #tpu.memory_space<vmem>>, vector<128x64xbf16>
      %cst_26 = arith.constant dense<0.000000e+00> : vector<8x64xf32>
      %28 = tpu.matmul %26, %27, %cst_26 {dimension_numbers = #tpu.dot_dimension_numbers<[1], [0], [0], [1], [0, 0, 1, 1], [], []>} : vector<8x128xbf16>, vector<128x64xbf16>, vector<8x64xf32> -> vector<8x64xf32>
      %29 = arith.addf %25, %28 : vector<8x64xf32>
      %c0_27 = arith.constant 0 : index
      %c0_28 = arith.constant 0 : index
      %30 = vector.load %arg6[%c0_27, %c0_28] : memref<1x64xf32, #tpu.memory_space<vmem>>, vector<1x64xf32>
      %31 = vector.broadcast %30 : vector<1x64xf32> to vector<8x64xf32>
      %32 = arith.addf %29, %31 : vector<8x64xf32>
      %cst_29 = arith.constant 0.000000e+00 : f32
      %33 = vector.broadcast %cst_29 : f32 to vector<8x64xf32>
      %34 = arith.cmpf ogt, %32, %33 : vector<8x64xf32>
      %cst_30 = arith.constant 2.000000e-01 : f32
      %35 = vector.broadcast %cst_30 : f32 to vector<8x64xf32>
      %36 = arith.mulf %35, %32 : vector<8x64xf32>
      %37 = arith.select %34, %32, %36 : vector<8x64xi1>, vector<8x64xf32>
      %38 = arith.truncf %37 : vector<8x64xf32> to vector<8x64xbf16>
      %c0_31 = arith.constant 0 : index
      %c0_32 = arith.constant 0 : index
      %39 = vector.load %arg12[%c0_31, %c0_32] : memref<8x64xbf16, #tpu.memory_space<vmem>>, vector<8x64xbf16>
      tpu.vector_store %arg12[%c0_31, %c0_32], %38 {strides = array<i32>} : memref<8x64xbf16, #tpu.memory_space<vmem>>, vector<8x64xbf16>,
      %cst_33 = arith.constant 0.000000e+00 : f32
      %40 = vector.broadcast %cst_33 : f32 to vector<8x32xf32>
      %c0_34 = arith.constant 0 : index
      %c0_35 = arith.constant 0 : index
      %41 = vector.load %arg13[%c0_34, %c0_35] : memref<8x32xf32, #tpu.memory_space<vmem>>, vector<8x32xf32>
      tpu.vector_store %arg13[%c0_34, %c0_35], %40 {strides = array<i32>} : memref<8x32xf32, #tpu.memory_space<vmem>>, vector<8x32xf32>,
    } else {
    }
    %c0 = arith.constant 0 : index
    %c0_1 = arith.constant 0 : index
    %3 = vector.load %arg12[%c0, %c0_1] : memref<8x64xbf16, #tpu.memory_space<vmem>>, vector<8x64xbf16>
    %c0_2 = arith.constant 0 : index
    %c0_3 = arith.constant 0 : index
    %4 = vector.load %arg7[%c0_2, %c0_3] : memref<64x64xbf16, #tpu.memory_space<vmem>>, vector<64x64xbf16>
    %cst = arith.constant dense<0.000000e+00> : vector<8x64xf32>
    %5 = tpu.matmul %3, %4, %cst {dimension_numbers = #tpu.dot_dimension_numbers<[1], [0], [0], [1], [0, 0, 1, 1], [], []>} : vector<8x64xbf16>, vector<64x64xbf16>, vector<8x64xf32> -> vector<8x64xf32>
    %c0_4 = arith.constant 0 : index
    %c0_5 = arith.constant 0 : index
    %6 = vector.load %arg8[%c0_4, %c0_5] : memref<1x64xf32, #tpu.memory_space<vmem>>, vector<1x64xf32>
    %7 = vector.broadcast %6 : vector<1x64xf32> to vector<8x64xf32>
    %8 = arith.addf %5, %7 : vector<8x64xf32>
    %cst_6 = arith.constant 0.000000e+00 : f32
    %9 = vector.broadcast %cst_6 : f32 to vector<8x64xf32>
    %10 = arith.cmpf ogt, %8, %9 : vector<8x64xf32>
    %cst_7 = arith.constant 2.000000e-01 : f32
    %11 = vector.broadcast %cst_7 : f32 to vector<8x64xf32>
    %12 = arith.mulf %11, %8 : vector<8x64xf32>
    %13 = arith.select %10, %8, %12 : vector<8x64xi1>, vector<8x64xf32>
    %c0_8 = arith.constant 0 : index
    %c0_9 = arith.constant 0 : index
    %14 = vector.load %arg13[%c0_8, %c0_9] : memref<8x32xf32, #tpu.memory_space<vmem>>, vector<8x32xf32>
    %15 = arith.truncf %13 : vector<8x64xf32> to vector<8x64xbf16>
    %c0_10 = arith.constant 0 : index
    %c0_11 = arith.constant 0 : index
    %16 = vector.load %arg9[%c0_10, %c0_11] : memref<64x32xbf16, #tpu.memory_space<vmem>>, vector<64x32xbf16>
    %cst_12 = arith.constant dense<0.000000e+00> : vector<8x32xf32>
    %17 = tpu.matmul %15, %16, %cst_12 {dimension_numbers = #tpu.dot_dimension_numbers<[1], [0], [0], [1], [0, 0, 1, 1], [], []>} : vector<8x64xbf16>, vector<64x32xbf16>, vector<8x32xf32> -> vector<8x32xf32>
    %18 = arith.addf %14, %17 : vector<8x32xf32>
    %c0_13 = arith.constant 0 : index
    %c0_14 = arith.constant 0 : index
    %19 = vector.load %arg13[%c0_13, %c0_14] : memref<8x32xf32, #tpu.memory_space<vmem>>, vector<8x32xf32>
    tpu.vector_store %arg13[%c0_13, %c0_14], %18 {strides = array<i32>} : memref<8x32xf32, #tpu.memory_space<vmem>>, vector<8x32xf32>,
    %c0_i32_15 = arith.constant 0 : i32
    %20 = arith.cmpi eq, %arg1, %c0_i32_15 : i32
    %21 = arith.extui %20 : i1 to i32
    %c0_i32_16 = arith.constant 0 : i32
    %22 = arith.cmpi ne, %21, %c0_i32_16 : i32
    scf.if %22 {
      %c0_17 = arith.constant 0 : index
      %c0_18 = arith.constant 0 : index
      %23 = vector.load %arg13[%c0_17, %c0_18] : memref<8x32xf32, #tpu.memory_space<vmem>>, vector<8x32xf32>
      %c0_19 = arith.constant 0 : index
      %c0_20 = arith.constant 0 : index
      %24 = vector.load %arg10[%c0_19, %c0_20] : memref<1x32xf32, #tpu.memory_space<vmem>>, vector<1x32xf32>
      %25 = vector.broadcast %24 : vector<1x32xf32> to vector<8x32xf32>
      %26 = arith.addf %23, %25 : vector<8x32xf32>
      %cst_21 = arith.constant 0.000000e+00 : f32
      %27 = vector.broadcast %cst_21 : f32 to vector<8x32xf32>
      %28 = arith.maximumf %26, %27 : vector<8x32xf32>
      %c0_22 = arith.constant 0 : index
      %c0_23 = arith.constant 0 : index
      %29 = vector.load %arg11[%c0_22, %c0_23] : memref<8x32xf32, #tpu.memory_space<vmem>>, vector<8x32xf32>
      tpu.vector_store %arg11[%c0_22, %c0_23], %28 {strides = array<i32>} : memref<8x32xf32, #tpu.memory_space<vmem>>, vector<8x32xf32>,
    } else {
    }
    return
  }
  func.func @transform_0(%arg0: i32, %arg1: i32) -> (i32, i32) {
    %c0_i32 = arith.constant 0 : i32
    %c0_i32_0 = arith.constant 0 : i32
    return %arg0, %c0_i32 : i32, i32
  }
  func.func @transform_1(%arg0: i32, %arg1: i32) -> (i32, i32) {
    %c0_i32 = arith.constant 0 : i32
    %c0_i32_0 = arith.constant 0 : i32
    return %arg0, %c0_i32 : i32, i32
  }
  func.func @transform_2(%arg0: i32, %arg1: i32) -> (i32, i32) {
    %c0_i32 = arith.constant 0 : i32
    %c0_i32_0 = arith.constant 0 : i32
    %c0_i32_1 = arith.constant 0 : i32
    return %c0_i32, %c0_i32_0 : i32, i32
  }
  func.func @transform_3(%arg0: i32, %arg1: i32) -> (i32, i32) {
    %c0_i32 = arith.constant 0 : i32
    %c0_i32_0 = arith.constant 0 : i32
    %c0_i32_1 = arith.constant 0 : i32
    return %c0_i32, %c0_i32_0 : i32, i32
  }
  func.func @transform_4(%arg0: i32, %arg1: i32) -> (i32, i32) {
    %c0_i32 = arith.constant 0 : i32
    %c0_i32_0 = arith.constant 0 : i32
    %c0_i32_1 = arith.constant 0 : i32
    return %c0_i32, %c0_i32_0 : i32, i32
  }
  func.func @transform_5(%arg0: i32, %arg1: i32) -> (i32, i32) {
    %c0_i32 = arith.constant 0 : i32
    %c0_i32_0 = arith.constant 0 : i32
    return %c0_i32, %arg1 : i32, i32
  }
  func.func @transform_6(%arg0: i32, %arg1: i32) -> (i32, i32) {
    %c0_i32 = arith.constant 0 : i32
    %c0_i32_0 = arith.constant 0 : i32
    return %c0_i32, %arg1 : i32, i32
  }
  func.func @transform_7(%arg0: i32, %arg1: i32) -> (i32, i32) {
    %c0_i32 = arith.constant 0 : i32
    %c0_i32_0 = arith.constant 0 : i32
    return %arg1, %c0_i32 : i32, i32
  }
  func.func @transform_8(%arg0: i32, %arg1: i32) -> (i32, i32) {
    %c0_i32 = arith.constant 0 : i32
    %c0_i32_0 = arith.constant 0 : i32
    %c0_i32_1 = arith.constant 0 : i32
    return %c0_i32, %c0_i32_0 : i32, i32
  }
  func.func @transform_9(%arg0: i32, %arg1: i32) -> (i32, i32) {
    %c0_i32 = arith.constant 0 : i32
    %c0_i32_0 = arith.constant 0 : i32
    return %arg0, %c0_i32 : i32, i32
  }
}

</mosaic_0001>

<bundles_post_ra>
// kernel: tpu_custom_call.1
= control target key start
LH: loop header
LB: loop body
LE: loop exit
PB: predicated region body
PF: predicated region fallthrough
CT: control target
= control target key end

     0   :  { %v631_v1 = vmov 0.0   ;;  %vm632_vm0 = vmmov 0   ;;  %s821_s0 = inlined_call_operand.vmem [shape: bf16[8,128], index: 0, kind: input, shape index: {}]   ;;  %s822_s1 = inlined_call_operand.vmem [shape: bf16[8,128], index: 1, kind: input, shape index: {}]   ;;  %s823_s2 = inlined_call_operand.vmem [shape: bf16[128,64], index: 2, kind: input, shape index: {}]   ;;  %s824_s3 = inlined_call_operand.vmem [shape: bf16[128,64], index: 3, kind: input, shape index: {}]   ;;  %s825_s4 = inlined_call_operand.vmem [shape: f32[1,64], index: 4, kind: input, shape index: {}]   ;;  %s826_s5 = inlined_call_operand.vmem [shape: bf16[64,64], index: 5, kind: input, shape index: {}]   ;;  %s827_s6 = inlined_call_operand.vmem [shape: f32[1,64], index: 6, kind: input, shape index: {}]   ;;  %s828_s7 = inlined_call_operand.vmem [shape: bf16[64,32], index: 7, kind: input, shape index: {}]   ;;  %s829_s8 = inlined_call_operand.vmem [shape: f32[1,32], index: 8, kind: input, shape index: {}]   ;;  %s830_s9 = inlined_call_operand.hbm [shape: f32[8,32], index: 9, kind: output, shape index: {}]  }
   0x1   :  { %v583_v0 = vld [vmem:[%s824_s3] sm:$0xff]   ;;  %516 = vmatprep.subr.bf16.mxu0 %v631_v1  ;;  %536 = vmatprep.subr.bf16.mxu1 %v631_v1  ;;  %v585_v3 = vld [vmem:[%s824_s3 + $0x8] sm:$0xff]   ;;  %v587_v5 = vld [vmem:[%s824_s3 + $0x10] sm:$0xff]  }
   0x2   :  { %v584_v2 = vld [vmem:[%s823_s2] sm:$0xff]   ;;  %517 = vmatpush3.bf16.msra.mxu0 %v583_v0  ;;  %532 = vmatprep.mubr.msk.bf16.mxu0 %vm632_vm0, %v631_v1  ;;  %v586_v4 = vld [vmem:[%s823_s2 + $0x8] sm:$0xff]   ;;  %v588_v6 = vld [vmem:[%s823_s2 + $0x10] sm:$0xff]  }
   0x3   :  { %537 = vmatpush3.bf16.msra.mxu1 %v584_v2  ;;  %518 = vmatprep.subr.bf16.mxu0 %v631_v1  ;;  %v589_v7 = vld [vmem:[%s824_s3 + $0x18] sm:$0xff]   ;;  %v591_v9 = vld [vmem:[%s824_s3 + $0x20] sm:$0xff]   ;;  %v593_v11 = vld [vmem:[%s824_s3 + $0x28] sm:$0xff]  }
   0x4   :  { %538 = vmatprep.subr.bf16.mxu1 %v631_v1  ;;  %552 = vmatprep.mubr.msk.bf16.mxu1 %vm632_vm0, %v631_v1  ;;  %v590_v8 = vld [vmem:[%s823_s2 + $0x18] sm:$0xff]   ;;  %v592_v10 = vld [vmem:[%s823_s2 + $0x20] sm:$0xff]   ;;  %v594_v12 = vld [vmem:[%s823_s2 + $0x28] sm:$0xff]  }
   0x5   :  { %v595_v13 = vld [vmem:[%s824_s3 + $0x30] sm:$0xff]  }
   0x6   :  { %519 = vmatpush3.bf16.msra.mxu0 %v585_v3 }
   0x7   :  { %539 = vmatpush3.bf16.msra.mxu1 %v586_v4  ;;  %520 = vmatprep.subr.bf16.mxu0 %v631_v1 }
   0x8   :  { %540 = vmatprep.subr.bf16.mxu1 %v631_v1 }
   0xa   :  { %521 = vmatpush3.bf16.msra.mxu0 %v587_v5 }
   0xb   :  { %541 = vmatpush3.bf16.msra.mxu1 %v588_v6  ;;  %522 = vmatprep.subr.bf16.mxu0 %v631_v1 }
   0xc   :  { %542 = vmatprep.subr.bf16.mxu1 %v631_v1 }
   0xe   :  { %523 = vmatpush3.bf16.msra.mxu0 %v589_v7 }
   0xf   :  { %543 = vmatpush3.bf16.msra.mxu1 %v590_v8  ;;  %524 = vmatprep.subr.bf16.mxu0 %v631_v1 }
  0x10   :  { %544 = vmatprep.subr.bf16.mxu1 %v631_v1 }
  0x12   :  { %525 = vmatpush3.bf16.msra.mxu0 %v591_v9 }
  0x13   :  { %545 = vmatpush3.bf16.msra.mxu1 %v592_v10  ;;  %526 = vmatprep.subr.bf16.mxu0 %v631_v1 }
  0x14   :  { %546 = vmatprep.subr.bf16.mxu1 %v631_v1 }
  0x16   :  { %527 = vmatpush3.bf16.msra.mxu0 %v593_v11 }
  0x17   :  { %14 = vsyncpa [#allocation5], 0  ;;  %547 = vmatpush3.bf16.msra.mxu1 %v594_v12  ;;  %528 = vmatprep.subr.bf16.mxu0 %v631_v1  ;;  %v596_v14 = vld [vmem:[%s823_s2 + $0x30] sm:$0xff]   ;;  %v597_v15 = vld [vmem:[%s824_s3 + $0x38] sm:$0xff]   ;;  %vm260_vm2 = vcmask 519168   ;;  %vm304_vm3 = vcmask 523264  }
  0x18   :  { %548 = vmatprep.subr.bf16.mxu1 %v631_v1  ;;  %v598_v16 = vld [vmem:[%s823_s2 + $0x38] sm:$0xff]   ;;  %v55_v17 = vld [vmem:[%s822_s1] sm:$0xf]  ;;  %v600_v20 = vld [vmem:[%s826_s5 + $0x8] sm:$0xff]   ;;  %vm262_vm4 = vcmask 261120   ;;  %s633_s17 = smov [#allocation4]  }
  0x19   :  { %v38_v18 = vld [vmem:[%s821_s0] sm:$0xf]  ;;  %v601_v21 = vld [vmem:[%s826_s5 + $0x10] sm:$0xff]   ;;  %v602_v22 = vld [vmem:[%s826_s5 + $0x18] sm:$0xff]   ;;  %263 = vst.msk [vmem:[#allocation3] sm:$0xff] %vm262_vm4, %v631_v1  ;;  %s451_s18 = sshll.u32 %s633_s17, 4  ;;  %s452_s18 = int_to_ptr.vmem [resolvable:$true] %s451_s18 }
  0x1a   :  { %529 = vmatpush3.bf16.msra.mxu0 %v595_v13  ;;  %v599_v19 = vld [vmem:[%s826_s5] sm:$0xff]   ;;  %v604_v24 = vld [vmem:[%s828_s7 + $0x8] sm:$0xff]   ;;  %v605_v40 = vld [vmem:[%s828_s7 + $0x10] sm:$0xff]   ;;  %s607_s19 = scalar_lea.vmem %s452_s18, 128  ;;  %p612_p1 = scmp.lt.s32.totalorder %s452_s18, %s452_s18 }
  0x1b   :  { %549 = vmatpush3.bf16.msra.mxu1 %v596_v14  ;;  %530 = vmatprep.subr.bf16.mxu0 %v631_v1  ;;  %v603_v23 = vld [vmem:[%s828_s7] sm:$0xff]   ;;  %v606_v41 = vld [vmem:[%s828_s7 + $0x18] sm:$0xff]   ;;  %p608_p0 = scmp.ne.s32.totalorder %s452_s18, %s607_s19  ;;  %p613_p2 = scmp.lt.s32.totalorder %s607_s19, %s607_s19 }
  0x1c   :  { %550 = vmatprep.subr.bf16.mxu1 %v631_v1  ;;  %v475_v27 = vld [vmem:[%s825_s4] ss:$0 sm:$0xff] }
  0x1d   :  { %v476_v42 = vld [vmem:[%s827_s6] ss:$0 sm:$0xff]  ;;  %p614_p3 = por %p613_p2, %p612_p1 }
  0x1e   :  { %531 = vmatpush3.bf16.msra.mxu0 %v597_v15  ;;  %v487_v57 = vld [vmem:[%s829_s8] ss:$0 sm:$0xff] }
  0x1f   :  { %551 = vmatpush3.bf16.msra.mxu1 %v598_v16  ;;  %556 = vmatprep.subr.bf16.mxu0 %v631_v1  ;;  %p615_p4 = pnand %p614_p3, %p608_p0 }
  0x20   :  { %568 = vmatprep.subr.bf16.mxu1 %v631_v1  ;;  %v351_v51 = vld [vmem:[#allocation3] sm:$0xff] }
  0x21   :  { %533 = vmatmul.mubr.bf16.vlgmr.msra.gmra.mrb[0].mxu0 %v55_v17 }
  0x22   :  { %553 = vmatmul.mubr.bf16.vlgmr.msra.gmra.mrb[0].mxu1 %v38_v18  ;;  %564 = vmatprep.mubr.msk.bf16.mxu0 %vm632_vm0, %v631_v1 }
  0x23   :  { %576 = vmatprep.mubr.msk.bf16.mxu1 %vm632_vm0, %v631_v1  ;;  %557 = vmatpush3.bf16.msra.mxu0 %v599_v19 }
  0x24   :  { %558 = vmatprep.subr.bf16.mxu0 %v631_v1  ;;  %569 = vmatpush3.bf16.msra.mxu1 %v603_v23 }
  0x25   :  { %570 = vmatprep.subr.bf16.mxu1 %v631_v1 }
  0x27   :  { %559 = vmatpush3.bf16.msra.mxu0 %v600_v20 }
  0x28   :  { %560 = vmatprep.subr.bf16.mxu0 %v631_v1  ;;  %571 = vmatpush3.bf16.msra.mxu1 %v604_v24 }
  0x29   :  { %572 = vmatprep.subr.bf16.mxu1 %v631_v1 }
  0x2b   :  { %561 = vmatpush3.bf16.msra.mxu0 %v601_v21 }
  0x2c   :  { %562 = vmatprep.subr.bf16.mxu0 %v631_v1  ;;  %573 = vmatpush3.bf16.msra.mxu1 %v605_v40 }
  0x2d   :  { %574 = vmatprep.subr.bf16.mxu1 %v631_v1 }
  0x2f   :  { %563 = vmatpush3.bf16.msra.mxu0 %v602_v22 }
  0x30   :  { %575 = vmatpush3.bf16.msra.mxu1 %v606_v41 }
  0xf4   :  { %v154_v25 = vpop.f32.mrb[0].mxu0 }
  0xf5   :  { %v242_v26 = vpop.f32.mrb[0].mxu1  ;;  %v534_v28 = vpop.f32.mrb[1].mxu0 }
  0xf6   :  { %v243_v29 = vadd.f32 %v242_v26, %v154_v25  ;;  %v554_v30 = vpop.f32.mrb[1].mxu1  ;;  %v157_v31 = vpop.f32.mrb[2].mxu0 }
  0xf7   :  { %v245_v32 = vpop.f32.mrb[2].mxu1  ;;  %v535_v33 = vpop.f32.mrb[3].mxu0 }
  0xf8   :  { %v255_v34 = vadd.f32 %v475_v27, %v243_v29  ;;  %v555_v35 = vpop.f32.mrb[3].mxu1 }
  0xfa   :  { %vm256_vm1 = vcmp.gt.f32.partialorder %v255_v34, 0.0  ;;  %v257_v36 = vmul.f32 0.2, %v255_v34 }
  0xfc   :  { %v258_v37 = vsel %vm256_vm1, %v255_v34, %v257_v36 }
  0xfd   :  { %v259_v38 = vpack.c.bf16 %v258_v37, %v258_v37 }
  0xff   :  { %261 = vst.msk [vmem:[#allocation2] sm:$0xf] %vm260_vm2, %v259_v38 }
 0x106   :  { %v264_v39 = vld [vmem:[#allocation2] sm:$0xf] }
 0x107   :  { %565 = vmatmul.mubr.msk.bf16.vlgmr.msra.gmra.mrb[4].mxu0 %vm304_vm3, %v264_v39 }
 0x1da   :  { %v342_v43 = vpop.f32.mrb[4].mxu0 }
 0x1db   :  { %v343_v44 = vadd.f32 %v476_v42, %v342_v43  ;;  %v566_v45 = vpop.f32.mrb[5].mxu0 }
 0x1dc   :  { %v345_v46 = vpop.f32.mrb[6].mxu0 }
 0x1dd   :  { %vm348_vm5 = vcmp.gt.f32.partialorder %v343_v44, 0.0  ;;  %v349_v47 = vmul.f32 0.2, %v343_v44  ;;  %v567_v48 = vpop.f32.mrb[7].mxu0 }
 0x1df   :  { %v350_v49 = vsel %vm348_vm5, %v343_v44, %v349_v47 }
 0x1e0   :  { %v352_v50 = vpack.c.bf16 %v350_v49, %v350_v49 }
 0x1e2   :  { %577 = vmatmul.mubr.msk.bf16.vlgmr.msra.gmra.mrb[4].mxu1 %vm304_vm3, %v352_v50 }
 0x2b5   :  { %v422_v52 = vpop.f32.mrb[4].mxu1 }
 0x2b6   :  { %v428_v53 = vadd.f32 %v422_v52, %v351_v51  ;;  %v578_v54 = vpop.f32.mrb[5].mxu1 }
 0x2b7   :  { %v425_v55 = vpop.f32.mrb[6].mxu1 }
 0x2b8   :  { %430 = vst.msk [vmem:[#allocation3] sm:$0xff] %vm262_vm4, %v428_v53  ;;  %v579_v56 = vpop.f32.mrb[7].mxu1 }
 0x2bf   :  { %v434_v58 = vld [vmem:[#allocation3] sm:$0xff] }
 0x2c0   :  { %v442_v59 = vadd.f32 %v487_v57, %v434_v58 }
 0x2c2   :  { %v443_v60 = vmax.f32 %v442_v59, 0.0 }
 0x2c4   :  { %444 = vst.msk [vmem:[#allocation4] sm:$0xff] %vm262_vm4, %v443_v60 }
 0x2c5   :  { %618 = shalt.err (!%p615_p4)
}
 0x2c6   :  { %s619_s22 = scalar_lea.hbm %s830_s9, 128 }
 0x2c7   :  { %p620_p5 = scmp.ne.s32.totalorder %s830_s9, %s619_s22  ;;  %p623_p6 = scmp.lt.u32.totalorder %s619_s22, %s830_s9 }
 0x2c9   :  { %p625_p7 = pnand %p623_p6, %p620_p5 }
 0x2cb   :  { %628 = shalt.err (!%p625_p7)
}
 0x2cc   :  { %454 = dma.vmem_to_hbm [thread:$0]  %s452_s18, 128, %s830_s9, [#allocation5]  }
 0x2cd   :  { %629 = dma.done.wait [#allocation5], 128  }
 0x2ce   :  { %630 = vsyncadd [#allocation5], 4294967168 }
 0x2cf   :  { %458 = vsyncpa [#allocation5], 1 }

// kernel: tpu_custom_call.1
= control target key start
LH: loop header
LB: loop body
LE: loop exit
PB: predicated region body
PF: predicated region fallthrough
CT: control target
= control target key end

     0   :  { %v631_v1 = vmov 0.0   ;;  %vm632_vm0 = vmmov 0   ;;  %s821_s0 = inlined_call_operand.vmem [shape: bf16[8,128], index: 0, kind: input, shape index: {}]   ;;  %s822_s1 = inlined_call_operand.vmem [shape: bf16[8,128], index: 1, kind: input, shape index: {}]   ;;  %s823_s2 = inlined_call_operand.vmem [shape: bf16[128,64], index: 2, kind: input, shape index: {}]   ;;  %s824_s3 = inlined_call_operand.vmem [shape: bf16[128,64], index: 3, kind: input, shape index: {}]   ;;  %s825_s4 = inlined_call_operand.vmem [shape: f32[1,64], index: 4, kind: input, shape index: {}]   ;;  %s826_s5 = inlined_call_operand.vmem [shape: bf16[64,64], index: 5, kind: input, shape index: {}]   ;;  %s827_s6 = inlined_call_operand.vmem [shape: f32[1,64], index: 6, kind: input, shape index: {}]   ;;  %s828_s7 = inlined_call_operand.vmem [shape: bf16[64,32], index: 7, kind: input, shape index: {}]   ;;  %s829_s8 = inlined_call_operand.vmem [shape: f32[1,32], index: 8, kind: input, shape index: {}]   ;;  %s830_s9 = inlined_call_operand.hbm [shape: f32[8,32], index: 9, kind: output, shape index: {}]  }
   0x1   :  { %v583_v0 = vld [vmem:[%s824_s3] sm:$0xff]   ;;  %516 = vmatprep.subr.bf16.mxu0 %v631_v1  ;;  %536 = vmatprep.subr.bf16.mxu1 %v631_v1  ;;  %v585_v3 = vld [vmem:[%s824_s3 + $0x8] sm:$0xff]   ;;  %v587_v5 = vld [vmem:[%s824_s3 + $0x10] sm:$0xff]  }
   0x2   :  { %v584_v2 = vld [vmem:[%s823_s2] sm:$0xff]   ;;  %517 = vmatpush3.bf16.msra.mxu0 %v583_v0  ;;  %532 = vmatprep.mubr.msk.bf16.mxu0 %vm632_vm0, %v631_v1  ;;  %v586_v4 = vld [vmem:[%s823_s2 + $0x8] sm:$0xff]   ;;  %v588_v6 = vld [vmem:[%s823_s2 + $0x10] sm:$0xff]  }
   0x3   :  { %537 = vmatpush3.bf16.msra.mxu1 %v584_v2  ;;  %518 = vmatprep.subr.bf16.mxu0 %v631_v1  ;;  %v589_v7 = vld [vmem:[%s824_s3 + $0x18] sm:$0xff]   ;;  %v591_v9 = vld [vmem:[%s824_s3 + $0x20] sm:$0xff]   ;;  %v593_v11 = vld [vmem:[%s824_s3 + $0x28] sm:$0xff]  }
   0x4   :  { %538 = vmatprep.subr.bf16.mxu1 %v631_v1  ;;  %552 = vmatprep.mubr.msk.bf16.mxu1 %vm632_vm0, %v631_v1  ;;  %v590_v8 = vld [vmem:[%s823_s2 + $0x18] sm:$0xff]   ;;  %v592_v10 = vld [vmem:[%s823_s2 + $0x20] sm:$0xff]   ;;  %v594_v12 = vld [vmem:[%s823_s2 + $0x28] sm:$0xff]  }
   0x5   :  { %v595_v13 = vld [vmem:[%s824_s3 + $0x30] sm:$0xff]  }
   0x6   :  { %519 = vmatpush3.bf16.msra.mxu0 %v585_v3 }
   0x7   :  { %539 = vmatpush3.bf16.msra.mxu1 %v586_v4  ;;  %520 = vmatprep.subr.bf16.mxu0 %v631_v1 }
   0x8   :  { %540 = vmatprep.subr.bf16.mxu1 %v631_v1 }
   0xa   :  { %521 = vmatpush3.bf16.msra.mxu0 %v587_v5 }
   0xb   :  { %541 = vmatpush3.bf16.msra.mxu1 %v588_v6  ;;  %522 = vmatprep.subr.bf16.mxu0 %v631_v1 }
   0xc   :  { %542 = vmatprep.subr.bf16.mxu1 %v631_v1 }
   0xe   :  { %523 = vmatpush3.bf16.msra.mxu0 %v589_v7 }
   0xf   :  { %543 = vmatpush3.bf16.msra.mxu1 %v590_v8  ;;  %524 = vmatprep.subr.bf16.mxu0 %v631_v1 }
  0x10   :  { %544 = vmatprep.subr.bf16.mxu1 %v631_v1 }
  0x12   :  { %525 = vmatpush3.bf16.msra.mxu0 %v591_v9 }
  0x13   :  { %545 = vmatpush3.bf16.msra.mxu1 %v592_v10  ;;  %526 = vmatprep.subr.bf16.mxu0 %v631_v1 }
  0x14   :  { %546 = vmatprep.subr.bf16.mxu1 %v631_v1 }
  0x16   :  { %527 = vmatpush3.bf16.msra.mxu0 %v593_v11 }
  0x17   :  { %14 = vsyncpa [#allocation5], 0  ;;  %547 = vmatpush3.bf16.msra.mxu1 %v594_v12  ;;  %528 = vmatprep.subr.bf16.mxu0 %v631_v1  ;;  %v596_v14 = vld [vmem:[%s823_s2 + $0x30] sm:$0xff]   ;;  %v597_v15 = vld [vmem:[%s824_s3 + $0x38] sm:$0xff]   ;;  %vm260_vm2 = vcmask 519168   ;;  %vm304_vm3 = vcmask 523264  }
  0x18   :  { %548 = vmatprep.subr.bf16.mxu1 %v631_v1  ;;  %v598_v16 = vld [vmem:[%s823_s2 + $0x38] sm:$0xff]   ;;  %v55_v17 = vld [vmem:[%s822_s1] sm:$0xf]  ;;  %v600_v20 = vld [vmem:[%s826_s5 + $0x8] sm:$0xff]   ;;  %vm262_vm4 = vcmask 261120   ;;  %s633_s17 = smov [#allocation4]  }
  0x19   :  { %v38_v18 = vld [vmem:[%s821_s0] sm:$0xf]  ;;  %v601_v21 = vld [vmem:[%s826_s5 + $0x10] sm:$0xff]   ;;  %v602_v22 = vld [vmem:[%s826_s5 + $0x18] sm:$0xff]   ;;  %263 = vst.msk [vmem:[#allocation3] sm:$0xff] %vm262_vm4, %v631_v1  ;;  %s451_s18 = sshll.u32 %s633_s17, 4  ;;  %s452_s18 = int_to_ptr.vmem [resolvable:$true] %s451_s18 }
  0x1a   :  { %529 = vmatpush3.bf16.msra.mxu0 %v595_v13  ;;  %v599_v19 = vld [vmem:[%s826_s5] sm:$0xff]   ;;  %v604_v24 = vld [vmem:[%s828_s7 + $0x8] sm:$0xff]   ;;  %v605_v40 = vld [vmem:[%s828_s7 + $0x10] sm:$0xff]   ;;  %s607_s19 = scalar_lea.vmem %s452_s18, 128  ;;  %p612_p1 = scmp.lt.s32.totalorder %s452_s18, %s452_s18 }
  0x1b   :  { %549 = vmatpush3.bf16.msra.mxu1 %v596_v14  ;;  %530 = vmatprep.subr.bf16.mxu0 %v631_v1  ;;  %v603_v23 = vld [vmem:[%s828_s7] sm:$0xff]   ;;  %v606_v41 = vld [vmem:[%s828_s7 + $0x18] sm:$0xff]   ;;  %p608_p0 = scmp.ne.s32.totalorder %s452_s18, %s607_s19  ;;  %p613_p2 = scmp.lt.s32.totalorder %s607_s19, %s607_s19 }
  0x1c   :  { %550 = vmatprep.subr.bf16.mxu1 %v631_v1  ;;  %v475_v27 = vld [vmem:[%s825_s4] ss:$0 sm:$0xff] }
  0x1d   :  { %v476_v42 = vld [vmem:[%s827_s6] ss:$0 sm:$0xff]  ;;  %p614_p3 = por %p613_p2, %p612_p1 }
  0x1e   :  { %531 = vmatpush3.bf16.msra.mxu0 %v597_v15  ;;  %v487_v57 = vld [vmem:[%s829_s8] ss:$0 sm:$0xff] }
  0x1f   :  { %551 = vmatpush3.bf16.msra.mxu1 %v598_v16  ;;  %556 = vmatprep.subr.bf16.mxu0 %v631_v1  ;;  %p615_p4 = pnand %p614_p3, %p608_p0 }
  0x20   :  { %568 = vmatprep.subr.bf16.mxu1 %v631_v1  ;;  %v351_v51 = vld [vmem:[#allocation3] sm:$0xff] }
  0x21   :  { %533 = vmatmul.mubr.bf16.vlgmr.msra.gmra.mrb[0].mxu0 %v55_v17 }
  0x22   :  { %553 = vmatmul.mubr.bf16.vlgmr.msra.gmra.mrb[0].mxu1 %v38_v18  ;;  %564 = vmatprep.mubr.msk.bf16.mxu0 %vm632_vm0, %v631_v1 }
  0x23   :  { %576 = vmatprep.mubr.msk.bf16.mxu1 %vm632_vm0, %v631_v1  ;;  %557 = vmatpush3.bf16.msra.mxu0 %v599_v19 }
  0x24   :  { %558 = vmatprep.subr.bf16.mxu0 %v631_v1  ;;  %569 = vmatpush3.bf16.msra.mxu1 %v603_v23 }
  0x25   :  { %570 = vmatprep.subr.bf16.mxu1 %v631_v1 }
  0x27   :  { %559 = vmatpush3.bf16.msra.mxu0 %v600_v20 }
  0x28   :  { %560 = vmatprep.subr.bf16.mxu0 %v631_v1  ;;  %571 = vmatpush3.bf16.msra.mxu1 %v604_v24 }
  0x29   :  { %572 = vmatprep.subr.bf16.mxu1 %v631_v1 }
  0x2b   :  { %561 = vmatpush3.bf16.msra.mxu0 %v601_v21 }
  0x2c   :  { %562 = vmatprep.subr.bf16.mxu0 %v631_v1  ;;  %573 = vmatpush3.bf16.msra.mxu1 %v605_v40 }
  0x2d   :  { %574 = vmatprep.subr.bf16.mxu1 %v631_v1 }
  0x2f   :  { %563 = vmatpush3.bf16.msra.mxu0 %v602_v22 }
  0x30   :  { %575 = vmatpush3.bf16.msra.mxu1 %v606_v41 }
  0xf4   :  { %v154_v25 = vpop.f32.mrb[0].mxu0 }
  0xf5   :  { %v242_v26 = vpop.f32.mrb[0].mxu1  ;;  %v534_v28 = vpop.f32.mrb[1].mxu0 }
  0xf6   :  { %v243_v29 = vadd.f32 %v242_v26, %v154_v25  ;;  %v554_v30 = vpop.f32.mrb[1].mxu1  ;;  %v157_v31 = vpop.f32.mrb[2].mxu0 }
  0xf7   :  { %v245_v32 = vpop.f32.mrb[2].mxu1  ;;  %v535_v33 = vpop.f32.mrb[3].mxu0 }
  0xf8   :  { %v255_v34 = vadd.f32 %v475_v27, %v243_v29  ;;  %v555_v35 = vpop.f32.mrb[3].mxu1 }
  0xfa   :  { %vm256_vm1 = vcmp.gt.f32.partialorder %v255_v34, 0.0  ;;  %v257_v36 = vmul.f32 0.2, %v255_v34 }
  0xfc   :  { %v258_v37 = vsel %vm256_vm1, %v255_v34, %v257_v36 }
  0xfd   :  { %v259_v38 = vpack.c.bf16 %v258_v37, %v258_v37 }
  0xff   :  { %261 = vst.msk [vmem:[#allocation2] sm:$0xf] %vm260_vm2, %v259_v38 }
 0x106   :  { %v264_v39 = vld [vmem:[#allocation2] sm:$0xf] }
 0x107   :  { %565 = vmatmul.mubr.msk.bf16.vlgmr.msra.gmra.mrb[4].mxu0 %vm304_vm3, %v264_v39 }
 0x1da   :  { %v342_v43 = vpop.f32.mrb[4].mxu0 }
 0x1db   :  { %v343_v44 = vadd.f32 %v476_v42, %v342_v43  ;;  %v566_v45 = vpop.f32.mrb[5].mxu0 }
 0x1dc   :  { %v345_v46 = vpop.f32.mrb[6].mxu0 }
 0x1dd   :  { %vm348_vm5 = vcmp.gt.f32.partialorder %v343_v44, 0.0  ;;  %v349_v47 = vmul.f32 0.2, %v343_v44  ;;  %v567_v48 = vpop.f32.mrb[7].mxu0 }
 0x1df   :  { %v350_v49 = vsel %vm348_vm5, %v343_v44, %v349_v47 }
 0x1e0   :  { %v352_v50 = vpack.c.bf16 %v350_v49, %v350_v49 }
 0x1e2   :  { %577 = vmatmul.mubr.msk.bf16.vlgmr.msra.gmra.mrb[4].mxu1 %vm304_vm3, %v352_v50 }
 0x2b5   :  { %v422_v52 = vpop.f32.mrb[4].mxu1 }
 0x2b6   :  { %v428_v53 = vadd.f32 %v422_v52, %v351_v51  ;;  %v578_v54 = vpop.f32.mrb[5].mxu1 }
 0x2b7   :  { %v425_v55 = vpop.f32.mrb[6].mxu1 }
 0x2b8   :  { %430 = vst.msk [vmem:[#allocation3] sm:$0xff] %vm262_vm4, %v428_v53  ;;  %v579_v56 = vpop.f32.mrb[7].mxu1 }
 0x2bf   :  { %v434_v58 = vld [vmem:[#allocation3] sm:$0xff] }
 0x2c0   :  { %v442_v59 = vadd.f32 %v487_v57, %v434_v58 }
 0x2c2   :  { %v443_v60 = vmax.f32 %v442_v59, 0.0 }
 0x2c4   :  { %444 = vst.msk [vmem:[#allocation4] sm:$0xff] %vm262_vm4, %v443_v60 }
 0x2c5   :  { %618 = shalt.err (!%p615_p4)
}
 0x2c6   :  { %s619_s22 = scalar_lea.hbm %s830_s9, 128 }
 0x2c7   :  { %p620_p5 = scmp.ne.s32.totalorder %s830_s9, %s619_s22  ;;  %p623_p6 = scmp.lt.u32.totalorder %s619_s22, %s830_s9 }
 0x2c9   :  { %p625_p7 = pnand %p623_p6, %p620_p5 }
 0x2cb   :  { %628 = shalt.err (!%p625_p7)
}
 0x2cc   :  { %454 = dma.vmem_to_hbm [thread:$0]  %s452_s18, 128, %s830_s9, [#allocation5]  }
 0x2cd   :  { %629 = dma.done.wait [#allocation5], 128  }
 0x2ce   :  { %630 = vsyncadd [#allocation5], 4294967168 }
 0x2cf   :  { %458 = vsyncpa [#allocation5], 1 }

</bundles_post_ra>
